<compile_context>
chip_gen: v5e
topology: v5e:2x2
jax: 0.10.0
libtpu: 0.0.40
codegen_flags: <defaults>
</compile_context>

<pallas_src>
import functools

import jax
import jax.numpy as jnp
from jax import lax
from jax.experimental import pallas as pl
from jax.experimental.pallas import tpu as pltpu


def _gelu_exact(x):
    # PyTorch nn.GELU default = exact (erf-based) GELU.
    # (tanh-approx GELU would move work to the EUP slot, but changes numerics
    #  vs PyTorch's default -- keep erf for parity.)
    return 0.5 * x * (1.0 + lax.erf(x * 0.7071067811865475))


def _conv_mlp_kernel(x_ref, w1t_ref, b1_ref, w2t_ref, b2_ref, o_ref, *,
                     use_vpu, kchunk):
    # x_ref  : (1, Cin,  tm)  pixel tile (pixels on lanes)
    # w1t_ref: (Chid, Cin)    fc1 weight, transposed
    # b1_ref : (Chid, 1)
    # w2t_ref: (Cout, Chid)   fc2 weight, transposed
    # b2_ref : (Cout, 1)
    # o_ref  : (1, Cout, tm)
    chid, cin = w1t_ref.shape
    cout = w2t_ref.shape[0]

    if use_vpu:
        # Tiny channel widths: unrolled broadcast-FMA on the VPU.  A K=4 /
        # K=16 contraction would waste a 128x128+ systolic MXU and pay its
        # push/pop latency for nothing.
        x = x_ref[0].astype(jnp.float32)                      # (Cin, tm)
        w1t = w1t_ref[...].astype(jnp.float32)                # (Chid, Cin)
        w2t = w2t_ref[...].astype(jnp.float32)                # (Cout, Chid)

        h = w1t[:, 0:1] * x[0:1, :]                           # (Chid, tm)
        for c in range(1, cin):
            h = h + w1t[:, c:c + 1] * x[c:c + 1, :]
        h = h + b1_ref[...].astype(jnp.float32)
        g = _gelu_exact(h)

        y = w2t[:, 0:1] * g[0:1, :]                           # (Cout, tm)
        for j in range(1, chid):
            y = y + w2t[:, j:j + 1] * g[j:j + 1, :]
        y = y + b2_ref[...].astype(jnp.float32)
        o_ref[0] = y.astype(o_ref.dtype)
    else:
        # General path: MXU matmuls, hidden dim in static chunks so the
        # (chunk, tm) f32 intermediate stays bounded.  Operands go to the MXU
        # in their native dtype (f32 accumulate via preferred_element_type).
        x = x_ref[0]                                          # (Cin, tm)
        tm = x.shape[-1]
        acc = jnp.zeros((cout, tm), jnp.float32)
        for k0 in range(0, chid, kchunk):
            k1 = min(k0 + kchunk, chid)
            h = jnp.dot(w1t_ref[k0:k1, :], x,
                        preferred_element_type=jnp.float32)
            h = h + b1_ref[k0:k1, :].astype(jnp.float32)
            g = _gelu_exact(h).astype(w2t_ref.dtype)
            acc = acc + jnp.dot(w2t_ref[:, k0:k1], g,
                                preferred_element_type=jnp.float32)
        acc = acc + b2_ref[...].astype(jnp.float32)
        o_ref[0] = acc.astype(o_ref.dtype)


def _round_up(v, m):
    return (v + m - 1) // m * m


def _pick_tm(requested, hw, cin, cout, itemsize, kdim):
    """Largest lane tile (multiple of 128) whose working set fits a
    conservative VMEM budget (safe for v7x's 64 MiB physical VMEM)."""
    budget = 24 << 20
    tm = max(128, min(_round_up(requested, 128), _round_up(hw, 128)))
    while tm > 128:
        io_bytes = 2 * tm * (cin + cout) * itemsize   # double-buffered in/out
        inter = 2 * 4 * kdim * tm                     # f32 h + gelu intermediates
        if io_bytes + inter <= budget:
            break
        tm -= 128
    return tm


@functools.partial(jax.jit, static_argnames=("tm",))
def conv_mlp(x_nchw, w1, b1, w2, b2, *, tm=1024):
    """x_nchw: (N, Cin, H, W).  w1: (Cin, Chid), b1: (Chid,),
    w2: (Chid, Cout), b2: (Cout,).  Returns (N, Cout, H, W)."""
    n, cin, hh, ww = x_nchw.shape
    chid = w1.shape[1]
    cout = w2.shape[1]
    hw = hh * ww

    # Free reshape (no transpose): pixels end up on the lane axis.
    x3 = x_nchw.reshape(n, cin, hw)

    kchunk = 512
    use_vpu = (cin <= 8 and chid <= 64 and cout <= 8)
    kdim = chid if use_vpu else min(chid, kchunk)
    itemsize = jnp.dtype(x_nchw.dtype).itemsize
    tm_eff = _pick_tm(tm, hw, cin, cout, itemsize, kdim)

    # Weights transposed once (tiny, one-off cost); biases as (C, 1) columns
    # so they broadcast along lanes inside the kernel.
    w1t = w1.T                       # (Chid, Cin)
    w2t = w2.T                       # (Cout, Chid)
    b1c = b1.reshape(chid, 1)
    b2c = b2.reshape(cout, 1)

    # VMEM budget: double-buffered tiles + resident (double-buffered) weights
    # + f32 intermediates.  Capped at 48 MiB -> safe on v5e/v6e/v7x.
    weights_b = 2 * 4 * (chid * cin + chid + cout * chid + cout)
    need = (weights_b
            + 2 * tm_eff * (cin + cout) * itemsize
            + 2 * 4 * kdim * tm_eff)
    vmem_limit = int(min(max(2 * need, 32 << 20), 48 << 20))

    grid = (n, pl.cdiv(hw, tm_eff))   # batch axis keeps >=2 parallel steps

    kernel = functools.partial(_conv_mlp_kernel,
                               use_vpu=use_vpu, kchunk=kchunk)

    out3 = pl.pallas_call(
        kernel,
        out_shape=jax.ShapeDtypeStruct((n, cout, hw), x_nchw.dtype),
        grid_spec=pltpu.PrefetchScalarGridSpec(
            num_scalar_prefetch=0,
            grid=grid,
            in_specs=[
                pl.BlockSpec((1, cin, tm_eff), lambda b, i: (b, 0, i)),  # x tile
                pl.BlockSpec((chid, cin), lambda b, i: (0, 0)),          # W1^T
                pl.BlockSpec((chid, 1), lambda b, i: (0, 0)),            # b1
                pl.BlockSpec((cout, chid), lambda b, i: (0, 0)),         # W2^T
                pl.BlockSpec((cout, 1), lambda b, i: (0, 0)),            # b2
            ],
            out_specs=pl.BlockSpec((1, cout, tm_eff), lambda b, i: (b, 0, i)),
        ),
        compiler_params=pltpu.CompilerParams(
            dimension_semantics=("parallel", "parallel"),
            vmem_limit_bytes=vmem_limit),
    )(x3, w1t, b1c, w2t, b2c)

    # Free reshape back to NCHW.
    return out3.reshape(n, cout, hh, ww)


def _reference(x_nchw, w1, b1, w2, b2):
    # Pure-JAX reference of the ConvMLP forward (1x1 convs == channel matmul).
    x = jnp.transpose(x_nchw, (0, 2, 3, 1)).astype(jnp.float32)
    h = jnp.einsum("nhwc,cd->nhwd", x, w1.astype(jnp.float32)) + b1
    h = _gelu_exact(h)
    y = jnp.einsum("nhwd,de->nhwe", h, w2.astype(jnp.float32)) + b2
    return jnp.transpose(y, (0, 3, 1, 2)).astype(x_nchw.dtype)


if __name__ == "__main__":
    key = jax.random.PRNGKey(0)
    k_x, k_w1, k_b1, k_w2, k_b2 = jax.random.split(key, 5)

    # Small shapes consistent with the module: batch=2, in=4, hidden=16,
    # out=4, spatial=16x16.
    N, C_IN, C_HID, C_OUT, H, W = 2, 4, 16, 4, 16, 16

    x = jax.random.normal(k_x, (N, C_IN, H, W), dtype=jnp.float32)

    # Deterministic parameter init (PyTorch Conv2d kaiming-uniform-ish scale).
    w1 = jax.random.uniform(k_w1, (C_IN, C_HID), jnp.float32,
                            -1.0 / jnp.sqrt(C_IN), 1.0 / jnp.sqrt(C_IN))
    b1 = jax.random.uniform(k_b1, (C_HID,), jnp.float32,
                            -1.0 / jnp.sqrt(C_IN), 1.0 / jnp.sqrt(C_IN))
    w2 = jax.random.uniform(k_w2, (C_HID, C_OUT), jnp.float32,
                            -1.0 / jnp.sqrt(C_HID), 1.0 / jnp.sqrt(C_HID))
    b2 = jax.random.uniform(k_b2, (C_OUT,), jnp.float32,
                            -1.0 / jnp.sqrt(C_HID), 1.0 / jnp.sqrt(C_HID))

    out = conv_mlp(x, w1, b1, w2, b2)
    out = jax.block_until_ready(out)

    ref = _reference(x, w1, b1, w2, b2)
    assert out.shape == (N, C_OUT, H, W), out.shape
    assert jnp.allclose(out, ref, atol=1e-5, rtol=1e-5), \
        float(jnp.max(jnp.abs(out - ref)))

    print("KERNEL_OK")
</pallas_src>

<mosaic_0001>
module attributes {stable_mosaic.version = 11 : i64} {
  func.func @_conv_mlp_kernel(%arg0: i32, %arg1: i32, %arg2: memref<1x4x256xf32, #tpu.memory_space<vmem>>, %arg3: memref<16x4xf32, #tpu.memory_space<vmem>>, %arg4: memref<16x1xf32, #tpu.memory_space<vmem>>, %arg5: memref<4x16xf32, #tpu.memory_space<vmem>>, %arg6: memref<4x1xf32, #tpu.memory_space<vmem>>, %arg7: memref<1x4x256xf32, #tpu.memory_space<vmem>>) attributes {dimension_semantics = [#tpu.dimension_semantics<parallel>, #tpu.dimension_semantics<parallel>], iteration_bounds = array<i64: 2, 1>, scalar_prefetch = 0 : i64, scratch_operands = 0 : i64, tpu.core_type = #tpu.core_type<tc>, window_params = [{transform_indices = @transform_0, window_bounds = array<i64: 1, 4, 256>}, {pipeline_mode = #tpu.pipeline_mode<synchronous>, transform_indices = @transform_1, window_bounds = array<i64: 16, 4>}, {pipeline_mode = #tpu.pipeline_mode<synchronous>, transform_indices = @transform_2, window_bounds = array<i64: 16, 1>}, {pipeline_mode = #tpu.pipeline_mode<synchronous>, transform_indices = @transform_3, window_bounds = array<i64: 4, 16>}, {pipeline_mode = #tpu.pipeline_mode<synchronous>, transform_indices = @transform_4, window_bounds = array<i64: 4, 1>}, {transform_indices = @transform_5, window_bounds = array<i64: 1, 4, 256>}]} {
    %c0 = arith.constant 0 : index
    %c0_0 = arith.constant 0 : index
    %c0_1 = arith.constant 0 : index
    %0 = vector.load %arg2[%c0, %c0_0, %c0_1] : memref<1x4x256xf32, #tpu.memory_space<vmem>>, vector<1x4x256xf32>
    %1 = vector.shape_cast %0 : vector<1x4x256xf32> to vector<4x256xf32>
    %c0_2 = arith.constant 0 : index
    %c0_3 = arith.constant 0 : index
    %2 = vector.load %arg3[%c0_2, %c0_3] : memref<16x4xf32, #tpu.memory_space<vmem>>, vector<16x4xf32>
    %c0_4 = arith.constant 0 : index
    %c0_5 = arith.constant 0 : index
    %3 = vector.load %arg5[%c0_4, %c0_5] : memref<4x16xf32, #tpu.memory_space<vmem>>, vector<4x16xf32>
    %4 = vector.extract_strided_slice %2 {offsets = [0, 0], sizes = [16, 1], strides = [1, 1]} : vector<16x4xf32> to vector<16x1xf32>
    %5 = vector.extract_strided_slice %1 {offsets = [0, 0], sizes = [1, 256], strides = [1, 1]} : vector<4x256xf32> to vector<1x256xf32>
    %6 = vector.broadcast %4 : vector<16x1xf32> to vector<16x256xf32>
    %7 = vector.broadcast %5 : vector<1x256xf32> to vector<16x256xf32>
    %8 = arith.mulf %6, %7 : vector<16x256xf32>
    %9 = vector.extract_strided_slice %2 {offsets = [0, 1], sizes = [16, 1], strides = [1, 1]} : vector<16x4xf32> to vector<16x1xf32>
    %10 = vector.extract_strided_slice %1 {offsets = [1, 0], sizes = [1, 256], strides = [1, 1]} : vector<4x256xf32> to vector<1x256xf32>
    %11 = vector.broadcast %9 : vector<16x1xf32> to vector<16x256xf32>
    %12 = vector.broadcast %10 : vector<1x256xf32> to vector<16x256xf32>
    %13 = arith.mulf %11, %12 : vector<16x256xf32>
    %14 = arith.addf %8, %13 : vector<16x256xf32>
    %15 = vector.extract_strided_slice %2 {offsets = [0, 2], sizes = [16, 1], strides = [1, 1]} : vector<16x4xf32> to vector<16x1xf32>
    %16 = vector.extract_strided_slice %1 {offsets = [2, 0], sizes = [1, 256], strides = [1, 1]} : vector<4x256xf32> to vector<1x256xf32>
    %17 = vector.broadcast %15 : vector<16x1xf32> to vector<16x256xf32>
    %18 = vector.broadcast %16 : vector<1x256xf32> to vector<16x256xf32>
    %19 = arith.mulf %17, %18 : vector<16x256xf32>
    %20 = arith.addf %14, %19 : vector<16x256xf32>
    %21 = vector.extract_strided_slice %2 {offsets = [0, 3], sizes = [16, 1], strides = [1, 1]} : vector<16x4xf32> to vector<16x1xf32>
    %22 = vector.extract_strided_slice %1 {offsets = [3, 0], sizes = [1, 256], strides = [1, 1]} : vector<4x256xf32> to vector<1x256xf32>
    %23 = vector.broadcast %21 : vector<16x1xf32> to vector<16x256xf32>
    %24 = vector.broadcast %22 : vector<1x256xf32> to vector<16x256xf32>
    %25 = arith.mulf %23, %24 : vector<16x256xf32>
    %26 = arith.addf %20, %25 : vector<16x256xf32>
    %c0_6 = arith.constant 0 : index
    %c0_7 = arith.constant 0 : index
    %27 = vector.load %arg4[%c0_6, %c0_7] : memref<16x1xf32, #tpu.memory_space<vmem>>, vector<16x1xf32>
    %28 = vector.broadcast %27 : vector<16x1xf32> to vector<16x256xf32>
    %29 = arith.addf %26, %28 : vector<16x256xf32>
    %cst = arith.constant 5.000000e-01 : f32
    %30 = vector.broadcast %cst : f32 to vector<16x256xf32>
    %31 = arith.mulf %30, %29 : vector<16x256xf32>
    %cst_8 = arith.constant 0.707106769 : f32
    %32 = vector.broadcast %cst_8 : f32 to vector<16x256xf32>
    %33 = arith.mulf %29, %32 : vector<16x256xf32>
    %34 = math.erf %33 : vector<16x256xf32>
    %cst_9 = arith.constant 1.000000e+00 : f32
    %35 = vector.broadcast %cst_9 : f32 to vector<16x256xf32>
    %36 = arith.addf %35, %34 : vector<16x256xf32>
    %37 = arith.mulf %31, %36 : vector<16x256xf32>
    %38 = vector.extract_strided_slice %3 {offsets = [0, 0], sizes = [4, 1], strides = [1, 1]} : vector<4x16xf32> to vector<4x1xf32>
    %39 = vector.extract_strided_slice %37 {offsets = [0, 0], sizes = [1, 256], strides = [1, 1]} : vector<16x256xf32> to vector<1x256xf32>
    %40 = vector.broadcast %38 : vector<4x1xf32> to vector<4x256xf32>
    %41 = vector.broadcast %39 : vector<1x256xf32> to vector<4x256xf32>
    %42 = arith.mulf %40, %41 : vector<4x256xf32>
    %43 = vector.extract_strided_slice %3 {offsets = [0, 1], sizes = [4, 1], strides = [1, 1]} : vector<4x16xf32> to vector<4x1xf32>
    %44 = vector.extract_strided_slice %37 {offsets = [1, 0], sizes = [1, 256], strides = [1, 1]} : vector<16x256xf32> to vector<1x256xf32>
    %45 = vector.broadcast %43 : vector<4x1xf32> to vector<4x256xf32>
    %46 = vector.broadcast %44 : vector<1x256xf32> to vector<4x256xf32>
    %47 = arith.mulf %45, %46 : vector<4x256xf32>
    %48 = arith.addf %42, %47 : vector<4x256xf32>
    %49 = vector.extract_strided_slice %3 {offsets = [0, 2], sizes = [4, 1], strides = [1, 1]} : vector<4x16xf32> to vector<4x1xf32>
    %50 = vector.extract_strided_slice %37 {offsets = [2, 0], sizes = [1, 256], strides = [1, 1]} : vector<16x256xf32> to vector<1x256xf32>
    %51 = vector.broadcast %49 : vector<4x1xf32> to vector<4x256xf32>
    %52 = vector.broadcast %50 : vector<1x256xf32> to vector<4x256xf32>
    %53 = arith.mulf %51, %52 : vector<4x256xf32>
    %54 = arith.addf %48, %53 : vector<4x256xf32>
    %55 = vector.extract_strided_slice %3 {offsets = [0, 3], sizes = [4, 1], strides = [1, 1]} : vector<4x16xf32> to vector<4x1xf32>
    %56 = vector.extract_strided_slice %37 {offsets = [3, 0], sizes = [1, 256], strides = [1, 1]} : vector<16x256xf32> to vector<1x256xf32>
    %57 = vector.broadcast %55 : vector<4x1xf32> to vector<4x256xf32>
    %58 = vector.broadcast %56 : vector<1x256xf32> to vector<4x256xf32>
    %59 = arith.mulf %57, %58 : vector<4x256xf32>
    %60 = arith.addf %54, %59 : vector<4x256xf32>
    %61 = vector.extract_strided_slice %3 {offsets = [0, 4], sizes = [4, 1], strides = [1, 1]} : vector<4x16xf32> to vector<4x1xf32>
    %62 = vector.extract_strided_slice %37 {offsets = [4, 0], sizes = [1, 256], strides = [1, 1]} : vector<16x256xf32> to vector<1x256xf32>
    %63 = vector.broadcast %61 : vector<4x1xf32> to vector<4x256xf32>
    %64 = vector.broadcast %62 : vector<1x256xf32> to vector<4x256xf32>
    %65 = arith.mulf %63, %64 : vector<4x256xf32>
    %66 = arith.addf %60, %65 : vector<4x256xf32>
    %67 = vector.extract_strided_slice %3 {offsets = [0, 5], sizes = [4, 1], strides = [1, 1]} : vector<4x16xf32> to vector<4x1xf32>
    %68 = vector.extract_strided_slice %37 {offsets = [5, 0], sizes = [1, 256], strides = [1, 1]} : vector<16x256xf32> to vector<1x256xf32>
    %69 = vector.broadcast %67 : vector<4x1xf32> to vector<4x256xf32>
    %70 = vector.broadcast %68 : vector<1x256xf32> to vector<4x256xf32>
    %71 = arith.mulf %69, %70 : vector<4x256xf32>
    %72 = arith.addf %66, %71 : vector<4x256xf32>
    %73 = vector.extract_strided_slice %3 {offsets = [0, 6], sizes = [4, 1], strides = [1, 1]} : vector<4x16xf32> to vector<4x1xf32>
    %74 = vector.extract_strided_slice %37 {offsets = [6, 0], sizes = [1, 256], strides = [1, 1]} : vector<16x256xf32> to vector<1x256xf32>
    %75 = vector.broadcast %73 : vector<4x1xf32> to vector<4x256xf32>
    %76 = vector.broadcast %74 : vector<1x256xf32> to vector<4x256xf32>
    %77 = arith.mulf %75, %76 : vector<4x256xf32>
    %78 = arith.addf %72, %77 : vector<4x256xf32>
    %79 = vector.extract_strided_slice %3 {offsets = [0, 7], sizes = [4, 1], strides = [1, 1]} : vector<4x16xf32> to vector<4x1xf32>
    %80 = vector.extract_strided_slice %37 {offsets = [7, 0], sizes = [1, 256], strides = [1, 1]} : vector<16x256xf32> to vector<1x256xf32>
    %81 = vector.broadcast %79 : vector<4x1xf32> to vector<4x256xf32>
    %82 = vector.broadcast %80 : vector<1x256xf32> to vector<4x256xf32>
    %83 = arith.mulf %81, %82 : vector<4x256xf32>
    %84 = arith.addf %78, %83 : vector<4x256xf32>
    %85 = vector.extract_strided_slice %3 {offsets = [0, 8], sizes = [4, 1], strides = [1, 1]} : vector<4x16xf32> to vector<4x1xf32>
    %86 = vector.extract_strided_slice %37 {offsets = [8, 0], sizes = [1, 256], strides = [1, 1]} : vector<16x256xf32> to vector<1x256xf32>
    %87 = vector.broadcast %85 : vector<4x1xf32> to vector<4x256xf32>
    %88 = vector.broadcast %86 : vector<1x256xf32> to vector<4x256xf32>
    %89 = arith.mulf %87, %88 : vector<4x256xf32>
    %90 = arith.addf %84, %89 : vector<4x256xf32>
    %91 = vector.extract_strided_slice %3 {offsets = [0, 9], sizes = [4, 1], strides = [1, 1]} : vector<4x16xf32> to vector<4x1xf32>
    %92 = vector.extract_strided_slice %37 {offsets = [9, 0], sizes = [1, 256], strides = [1, 1]} : vector<16x256xf32> to vector<1x256xf32>
    %93 = vector.broadcast %91 : vector<4x1xf32> to vector<4x256xf32>
    %94 = vector.broadcast %92 : vector<1x256xf32> to vector<4x256xf32>
    %95 = arith.mulf %93, %94 : vector<4x256xf32>
    %96 = arith.addf %90, %95 : vector<4x256xf32>
    %97 = vector.extract_strided_slice %3 {offsets = [0, 10], sizes = [4, 1], strides = [1, 1]} : vector<4x16xf32> to vector<4x1xf32>
    %98 = vector.extract_strided_slice %37 {offsets = [10, 0], sizes = [1, 256], strides = [1, 1]} : vector<16x256xf32> to vector<1x256xf32>
    %99 = vector.broadcast %97 : vector<4x1xf32> to vector<4x256xf32>
    %100 = vector.broadcast %98 : vector<1x256xf32> to vector<4x256xf32>
    %101 = arith.mulf %99, %100 : vector<4x256xf32>
    %102 = arith.addf %96, %101 : vector<4x256xf32>
    %103 = vector.extract_strided_slice %3 {offsets = [0, 11], sizes = [4, 1], strides = [1, 1]} : vector<4x16xf32> to vector<4x1xf32>
    %104 = vector.extract_strided_slice %37 {offsets = [11, 0], sizes = [1, 256], strides = [1, 1]} : vector<16x256xf32> to vector<1x256xf32>
    %105 = vector.broadcast %103 : vector<4x1xf32> to vector<4x256xf32>
    %106 = vector.broadcast %104 : vector<1x256xf32> to vector<4x256xf32>
    %107 = arith.mulf %105, %106 : vector<4x256xf32>
    %108 = arith.addf %102, %107 : vector<4x256xf32>
    %109 = vector.extract_strided_slice %3 {offsets = [0, 12], sizes = [4, 1], strides = [1, 1]} : vector<4x16xf32> to vector<4x1xf32>
    %110 = vector.extract_strided_slice %37 {offsets = [12, 0], sizes = [1, 256], strides = [1, 1]} : vector<16x256xf32> to vector<1x256xf32>
    %111 = vector.broadcast %109 : vector<4x1xf32> to vector<4x256xf32>
    %112 = vector.broadcast %110 : vector<1x256xf32> to vector<4x256xf32>
    %113 = arith.mulf %111, %112 : vector<4x256xf32>
    %114 = arith.addf %108, %113 : vector<4x256xf32>
    %115 = vector.extract_strided_slice %3 {offsets = [0, 13], sizes = [4, 1], strides = [1, 1]} : vector<4x16xf32> to vector<4x1xf32>
    %116 = vector.extract_strided_slice %37 {offsets = [13, 0], sizes = [1, 256], strides = [1, 1]} : vector<16x256xf32> to vector<1x256xf32>
    %117 = vector.broadcast %115 : vector<4x1xf32> to vector<4x256xf32>
    %118 = vector.broadcast %116 : vector<1x256xf32> to vector<4x256xf32>
    %119 = arith.mulf %117, %118 : vector<4x256xf32>
    %120 = arith.addf %114, %119 : vector<4x256xf32>
    %121 = vector.extract_strided_slice %3 {offsets = [0, 14], sizes = [4, 1], strides = [1, 1]} : vector<4x16xf32> to vector<4x1xf32>
    %122 = vector.extract_strided_slice %37 {offsets = [14, 0], sizes = [1, 256], strides = [1, 1]} : vector<16x256xf32> to vector<1x256xf32>
    %123 = vector.broadcast %121 : vector<4x1xf32> to vector<4x256xf32>
    %124 = vector.broadcast %122 : vector<1x256xf32> to vector<4x256xf32>
    %125 = arith.mulf %123, %124 : vector<4x256xf32>
    %126 = arith.addf %120, %125 : vector<4x256xf32>
    %127 = vector.extract_strided_slice %3 {offsets = [0, 15], sizes = [4, 1], strides = [1, 1]} : vector<4x16xf32> to vector<4x1xf32>
    %128 = vector.extract_strided_slice %37 {offsets = [15, 0], sizes = [1, 256], strides = [1, 1]} : vector<16x256xf32> to vector<1x256xf32>
    %129 = vector.broadcast %127 : vector<4x1xf32> to vector<4x256xf32>
    %130 = vector.broadcast %128 : vector<1x256xf32> to vector<4x256xf32>
    %131 = arith.mulf %129, %130 : vector<4x256xf32>
    %132 = arith.addf %126, %131 : vector<4x256xf32>
    %c0_10 = arith.constant 0 : index
    %c0_11 = arith.constant 0 : index
    %133 = vector.load %arg6[%c0_10, %c0_11] : memref<4x1xf32, #tpu.memory_space<vmem>>, vector<4x1xf32>
    %134 = vector.broadcast %133 : vector<4x1xf32> to vector<4x256xf32>
    %135 = arith.addf %132, %134 : vector<4x256xf32>
    %c0_12 = arith.constant 0 : index
    %c0_13 = arith.constant 0 : index
    %c0_14 = arith.constant 0 : index
    %136 = vector.load %arg7[%c0_12, %c0_13, %c0_14] : memref<1x4x256xf32, #tpu.memory_space<vmem>>, vector<1x4x256xf32>
    %137 = vector.shape_cast %136 : vector<1x4x256xf32> to vector<4x256xf32>
    %138 = vector.shape_cast %135 : vector<4x256xf32> to vector<1x4x256xf32>
    tpu.vector_store %arg7[%c0_12, %c0_13, %c0_14], %138 {strides = array<i32>} : memref<1x4x256xf32, #tpu.memory_space<vmem>>, vector<1x4x256xf32>,
    return
  }
  func.func @transform_0(%arg0: i32, %arg1: i32) -> (i32, i32, i32) {
    %c0_i32 = arith.constant 0 : i32
    %c0_i32_0 = arith.constant 0 : i32
    return %arg0, %c0_i32, %arg1 : i32, i32, i32
  }
  func.func @transform_1(%arg0: i32, %arg1: i32) -> (i32, i32) {
    %c0_i32 = arith.constant 0 : i32
    %c0_i32_0 = arith.constant 0 : i32
    %c0_i32_1 = arith.constant 0 : i32
    return %c0_i32, %c0_i32_0 : i32, i32
  }
  func.func @transform_2(%arg0: i32, %arg1: i32) -> (i32, i32) {
    %c0_i32 = arith.constant 0 : i32
    %c0_i32_0 = arith.constant 0 : i32
    %c0_i32_1 = arith.constant 0 : i32
    return %c0_i32, %c0_i32_0 : i32, i32
  }
  func.func @transform_3(%arg0: i32, %arg1: i32) -> (i32, i32) {
    %c0_i32 = arith.constant 0 : i32
    %c0_i32_0 = arith.constant 0 : i32
    %c0_i32_1 = arith.constant 0 : i32
    return %c0_i32, %c0_i32_0 : i32, i32
  }
  func.func @transform_4(%arg0: i32, %arg1: i32) -> (i32, i32) {
    %c0_i32 = arith.constant 0 : i32
    %c0_i32_0 = arith.constant 0 : i32
    %c0_i32_1 = arith.constant 0 : i32
    return %c0_i32, %c0_i32_0 : i32, i32
  }
  func.func @transform_5(%arg0: i32, %arg1: i32) -> (i32, i32, i32) {
    %c0_i32 = arith.constant 0 : i32
    %c0_i32_0 = arith.constant 0 : i32
    return %arg0, %c0_i32, %arg1 : i32, i32, i32
  }
}

</mosaic_0001>

<bundles_post_ra>
// kernel: conv_mlp.1
= control target key start
LH: loop header
LB: loop body
LE: loop exit
PB: predicated region body
PF: predicated region fallthrough
CT: control target
= control target key end

     0   :  { %s966_s18 = smov 0   ;;  %s968_s19 = smov 0   ;;  %s1188_s0 = inlined_call_operand.vmem [shape: f32[2,4,256], index: 0, kind: input, shape index: {}]   ;;  %s1189_s1 = inlined_call_operand.vmem [shape: f32[16,4], index: 1, kind: input, shape index: {}]   ;;  %s1190_s2 = inlined_call_operand.vmem [shape: f32[16,1], index: 2, kind: input, shape index: {}]   ;;  %s1191_s3 = inlined_call_operand.vmem [shape: f32[4,16], index: 3, kind: input, shape index: {}]   ;;  %s1192_s4 = inlined_call_operand.vmem [shape: f32[4,1], index: 4, kind: input, shape index: {}]   ;;  %s1193_s5 = inlined_call_operand.vmem [shape: f32[2,4,256], index: 5, kind: output, shape index: {}]  }
   0x1   :  { %s970_s20 = smov 0  }
   0x2 LB: > { %s27_s21 = sadd.s32 1, %s914_s19  ;;  %p812_p0 = scmp.ge.s32.totalorder %s918_s20, 1  ;;  %s918_s20 = sphi %s970_s20, %s15_s20   ;;  %s914_s19 = sphi %s968_s19, %s1197_s19   ;;  %s910_s18 = sphi %s966_s18, %s1196_s18  }
   0x3   : > { %p29_p1 = scmp.ge.s32.totalorder %s27_s21, 2  ;;  %p208_p2 = scmp.lt.s32.totalorder %s918_s20, 3 }
   0x5   : > { %s1199_s21 = smov (%p29_p1, %s27_s21), 0  ;;  %p209_p3 = pnand %p812_p0, %p208_p2 }
   0x6   : > { %p245_p4 = scmp.lt.s32.totalorder (!%p209_p3), %s910_s18, 1 }
   0x7   : > { %212 = sbr.rel (%p209_p3) target bundleno = 240 (0xf0), region = 40 }
   0xc   : > { %v265_v0 = vld [vmem:[%s1189_s1] sm:$0xff]  ;;  %v920_v1 = vmov 1   ;;  %v921_v2 = vmov 0   ;;  %v922_v3 = vmov 2   ;;  %v266_v4 = vld [vmem:[%s1189_s1 + $0x8] sm:$0xff]  ;;  %v923_v5 = vmov 3  }
   0xd   : > { %866 = vset.pattern.permute.xlu1 %v920_v1  ;;  %865 = vset.pattern.permute.xlu0 %v921_v2  ;;  %v355_v6 = vld [vmem:[%s1190_s2] sm:$0xff]  ;;  %v356_v7 = vld [vmem:[%s1190_s2 + $0x8] sm:$0xff]  ;;  %v924_v9 = vmov 4   ;;  %v925_v10 = vmov 7   ;;  %v926_v11 = vmov 5   ;;  %v927_v12 = vmov 6  }
   0xe   : > { %290 = vperm.xlu1 %866, %v265_v0   ;;  %270 = vperm.xlu0 %865, %v265_v0   ;;  %v267_v8 = vld [vmem:[%s1191_s3] sm:$0xf]  ;;  %v928_v13 = vmov 12   ;;  %v929_v14 = vmov 8   ;;  %v930_v15 = vmov 9   ;;  %v931_v16 = vmov 10  }
   0xf   : > { %867 = vset.pattern.permute.xlu2 %v922_v3  ;;  %v932_v17 = vmov 11   ;;  %v933_v18 = vmov 13   ;;  %v934_v19 = vmov 14   ;;  %v935_v20 = vmov 15   ;;  %v706_v21 = vld [vmem:[%s1192_s4] sm:$0xf] }
  0x10   : > { %312 = vperm.xlu2 %867, %v265_v0   ;;  %s1201_s18 = smov (!%p245_p4, %s910_s18), 1 }
  0x11   : > { %s823_s9 = sshll.u32 %s1201_s18, 3 }
  0x12   : > { %s252_s12 = scalar_lea.vmem %s1188_s0, %s823_s9  ;;  %s262_s15 = scalar_lea.vmem %s1193_s5, %s823_s9 }
  0x13   : > { %v264_v22 = vld [vmem:[%s252_s12] sm:$0xff] }
  0x14   : > { %v297_v23 = vperm.slane %v264_v22, 1  ;;  %v298_v24 = vperm.slane %v264_v22, 5  ;;  %v279_v25 = vperm.slane %v264_v22, 0  ;;  %v280_v26 = vperm.slane %v264_v22, 4 }
  0x15   : > { %v319_v28 = vperm.slane %v264_v22, 2  ;;  %v320_v29 = vperm.slane %v264_v22, 6  ;;  %v341_v38 = vperm.slane %v264_v22, 3  ;;  %v342_v39 = vperm.slane %v264_v22, 7 }
  0x16   : > { %294 = vperm.xlu1 %866, %v266_v4   ;;  %275 = vperm.xlu0 %865, %v266_v4   ;;  %v301_v30 = vperm.slane %v297_v23, 1  ;;  %v302_v31 = vperm.slane %v298_v24, 1  ;;  %v283_v32 = vperm.slane %v279_v25, 0  ;;  %v284_v33 = vperm.slane %v280_v26, 0 }
  0x17   : > { %v323_v36 = vperm.slane %v319_v28, 2  ;;  %v324_v37 = vperm.slane %v320_v29, 2  ;;  %v345_v44 = vperm.slane %v341_v38, 3  ;;  %v346_v45 = vperm.slane %v342_v39, 3 }
  0x18   : > { %868 = vset.pattern.permute.xlu2 %v923_v5 }
  0x19   : > { %334 = vperm.xlu2 %868, %v265_v0  }
  0x1e   : > { %869 = vset.pattern.permute.xlu1 %v922_v3  ;;  %359 = vperm.xlu0 %865, %v355_v6  }
  0x1f   : > { %316 = vperm.xlu1 %869, %v266_v4  }
  0x21   : > { %338 = vperm.xlu2 %868, %v266_v4  }
  0x26   : > { %364 = vperm.xlu0 %865, %v356_v7  }
  0x27   : > { %870 = vset.pattern.permute.xlu1 %v921_v2 }
  0x28   : > { %549 = vperm.xlu1 %870, %v267_v8  }
  0x29   : > { %871 = vset.pattern.permute.xlu2 %v920_v1 }
  0x2a   : > { %557 = vperm.xlu2 %871, %v267_v8  }
  0x2e   : > { %872 = vset.pattern.permute.xlu0 %v922_v3 }
  0x2f   : > { %567 = vperm.xlu0 %872, %v267_v8  }
  0x30   : > { %873 = vset.pattern.permute.xlu1 %v923_v5 }
  0x31   : > { %577 = vperm.xlu1 %873, %v267_v8  }
  0x32   : > { %874 = vset.pattern.permute.xlu2 %v924_v9 }
  0x33   : > { %587 = vperm.xlu2 %874, %v267_v8  }
  0x37   : > { %877 = vset.pattern.permute.xlu0 %v925_v10 }
  0x38   : > { %617 = vperm.xlu0 %877, %v267_v8  }
  0x39   : > { %875 = vset.pattern.permute.xlu1 %v926_v11 }
  0x3a   : > { %597 = vperm.xlu1 %875, %v267_v8  }
  0x3b   : > { %876 = vset.pattern.permute.xlu2 %v927_v12 }
  0x3c   : > { %607 = vperm.xlu2 %876, %v267_v8  }
  0x40   : > { %882 = vset.pattern.permute.xlu0 %v928_v13 }
  0x41   : > { %667 = vperm.xlu0 %882, %v267_v8  }
  0x42   : > { %878 = vset.pattern.permute.xlu1 %v929_v14 }
  0x43   : > { %627 = vperm.xlu1 %878, %v267_v8  }
  0x44   : > { %879 = vset.pattern.permute.xlu2 %v930_v15 }
  0x45   : > { %637 = vperm.xlu2 %879, %v267_v8  }
  0x49   : > { %887 = vset.pattern.permute.xlu0 %v921_v2 }
  0x4b   : > { %880 = vset.pattern.permute.xlu1 %v931_v16 }
  0x4c   : > { %647 = vperm.xlu1 %880, %v267_v8  }
  0x4d   : > { %881 = vset.pattern.permute.xlu2 %v932_v17 }
  0x4e   : > { %657 = vperm.xlu2 %881, %v267_v8  }
  0x54   : > { %883 = vset.pattern.permute.xlu1 %v933_v18 }
  0x55   : > { %677 = vperm.xlu1 %883, %v267_v8  }
  0x56   : > { %884 = vset.pattern.permute.xlu2 %v934_v19 }
  0x57   : > { %687 = vperm.xlu2 %884, %v267_v8  }
  0x5d   : > { %885 = vset.pattern.permute.xlu1 %v935_v20 }
  0x5e   : > { %697 = vperm.xlu1 %885, %v267_v8  }
  0x5f   : > { %886 = vset.pattern.permute.xlu2 %v921_v2 }
  0x60   : > { %709 = vperm.xlu2 %886, %v706_v21  }
  0x6a   : > { %v313_v27 = vpop.permute.xlu2 %312 }
  0x6b   : > { %v325_v46 = vmul.f32 %v323_v36, %v313_v27  ;;  %v326_v47 = vmul.f32 %v324_v37, %v313_v27 }
  0x73   : > { %v335_v50 = vpop.permute.xlu2 %334 }
  0x74   : > { %v347_v53 = vmul.f32 %v345_v44, %v335_v50  ;;  %v348_v54 = vmul.f32 %v346_v45, %v335_v50 }
  0x7b   : > { %v339_v0 = vpop.permute.xlu2 %338 }
  0x7c   : > { %v349_v10 = vmul.f32 %v345_v44, %v339_v0  ;;  %v350_v11 = vmul.f32 %v346_v45, %v339_v0 }
  0x80   : > { %v291_v34 = vpop.permute.xlu1 %290  ;;  %v271_v35 = vpop.permute.xlu0 %270 }
  0x81   : > { %v303_v40 = vmul.f32 %v301_v30, %v291_v34  ;;  %v304_v41 = vmul.f32 %v302_v31, %v291_v34  ;;  %v285_v42 = vmul.f32 %v283_v32, %v271_v35  ;;  %v286_v43 = vmul.f32 %v284_v33, %v271_v35 }
  0x83   : > { %v307_v48 = vadd.f32 %v303_v40, %v285_v42  ;;  %v308_v49 = vadd.f32 %v304_v41, %v286_v43 }
  0x85   : > { %v329_v55 = vadd.f32 %v325_v46, %v307_v48  ;;  %v330_v56 = vadd.f32 %v326_v47, %v308_v49 }
  0x87   : > { %v351_v61 = vadd.f32 %v347_v53, %v329_v55  ;;  %v352_v62 = vadd.f32 %v348_v54, %v330_v56 }
  0x88   : > { %v295_v51 = vpop.permute.xlu1 %294  ;;  %v276_v52 = vpop.permute.xlu0 %275 }
  0x89   : > { %v305_v57 = vmul.f32 %v301_v30, %v295_v51  ;;  %v306_v58 = vmul.f32 %v302_v31, %v295_v51  ;;  %v287_v59 = vmul.f32 %v283_v32, %v276_v52  ;;  %v288_v60 = vmul.f32 %v284_v33, %v276_v52 }
  0x8b   : > { %v309_v4 = vadd.f32 %v305_v57, %v287_v59  ;;  %v310_v5 = vadd.f32 %v306_v58, %v288_v60 }
  0x90   : > { %v360_v63 = vpop.permute.xlu0 %359 }
  0x91   : > { %v1018_v1 = vadd.f32 %v360_v63, %v351_v61  ;;  %v1020_v2 = vadd.f32 %v360_v63, %v352_v62  ;;  %v317_v3 = vpop.permute.xlu1 %316 }
  0x92   : > { %v327_v6 = vmul.f32 %v323_v36, %v317_v3  ;;  %v328_v7 = vmul.f32 %v324_v37, %v317_v3 }
  0x93   : > { %v1023_v8 = vmul.f32 0.70710677, %v1018_v1  ;;  %v1026_v9 = vmul.f32 0.70710677, %v1020_v2 }
  0x94   : > { %v331_v12 = vadd.f32 %v327_v6, %v309_v4  ;;  %v332_v13 = vadd.f32 %v328_v7, %v310_v5 }
  0x95   : > { %v379_v14 = vmul.f32 %v1023_v8, %v1023_v8  ;;  %v419_v15 = vmul.f32 %v1026_v9, %v1026_v9 }
  0x96   : > { %v353_v16 = vadd.f32 %v349_v10, %v331_v12  ;;  %v354_v17 = vadd.f32 %v350_v11, %v332_v13 }
  0x97   : > { %v1032_v18 = vmin.f32 %v379_v14, 16.0  ;;  %v1034_v19 = vmin.f32 %v419_v15, 16.0 }
  0x98   : > { %v365_v20 = vpop.permute.xlu0 %364 }
  0x99   : > { %v381_v21 = vmul.f32 2.1237322e-06, %v1032_v18  ;;  %v392_v22 = vmul.f32 3.8918573e-05, %v1032_v18  ;;  %v421_v23 = vmul.f32 2.1237322e-06, %v1034_v19  ;;  %v1039_v24 = vadd.f32 %v365_v20, %v353_v16 }
  0x9a   : > { %v432_v25 = vmul.f32 3.8918573e-05, %v1034_v19  ;;  %v1042_v26 = vadd.f32 %v365_v20, %v354_v17  ;;  %v1079_v16 = vpop.permute.xlu1 %549 }
  0x9b   : > { %v382_v27 = vadd.f32 0.00028619796, %v381_v21  ;;  %v393_v28 = vadd.f32 0.001143296, %v392_v22  ;;  %v422_v29 = vadd.f32 0.00028619796, %v421_v23 }
  0x9c   : > { %v433_v30 = vadd.f32 0.001143296, %v432_v25  ;;  %v1045_v31 = vmul.f32 0.70710677, %v1039_v24  ;;  %v1051_v35 = vmul.f32 0.70710677, %v1042_v26 }
  0x9d   : > { %v383_v32 = vmul.f32 %v382_v27, %v1032_v18  ;;  %v394_v33 = vmul.f32 %v393_v28, %v1032_v18  ;;  %v423_v34 = vmul.f32 %v422_v29, %v1034_v19 }
  0x9e   : > { %v434_v36 = vmul.f32 %v433_v30, %v1034_v19  ;;  %v459_v37 = vmul.f32 %v1045_v31, %v1045_v31  ;;  %v499_v41 = vmul.f32 %v1051_v35, %v1051_v35 }
  0x9f   : > { %v384_v38 = vadd.f32 0.0036580483, %v383_v32  ;;  %v395_v39 = vadd.f32 0.014752088, %v394_v33  ;;  %v424_v40 = vadd.f32 0.0036580483, %v423_v34  ;;  %v1087_v34 = vpop.permute.xlu2 %557 }
  0xa0   : > { %v435_v42 = vadd.f32 0.014752088, %v434_v36  ;;  %v1058_v43 = vmin.f32 %v459_v37, 16.0  ;;  %v1063_v47 = vmin.f32 %v499_v41, 16.0 }
  0xa1   : > { %v385_v44 = vmul.f32 %v384_v38, %v1032_v18  ;;  %v396_v45 = vmul.f32 %v395_v39, %v1032_v18  ;;  %v425_v46 = vmul.f32 %v424_v40, %v1034_v19 }
  0xa2   : > { %v436_v48 = vmul.f32 %v435_v42, %v1034_v19  ;;  %v461_v49 = vmul.f32 2.1237322e-06, %v1058_v43  ;;  %v472_v50 = vmul.f32 3.8918573e-05, %v1058_v43  ;;  %v501_v59 = vmul.f32 2.1237322e-06, %v1063_v47 }
  0xa3   : > { %v386_v51 = vadd.f32 0.05243302, %v385_v44  ;;  %v397_v52 = vadd.f32 0.112945676, %v396_v45  ;;  %v426_v58 = vadd.f32 0.05243302, %v425_v46 }
  0xa4   : > { %v437_v53 = vadd.f32 0.112945676, %v436_v48  ;;  %v462_v54 = vadd.f32 0.00028619796, %v461_v49  ;;  %v473_v55 = vadd.f32 0.001143296, %v472_v50  ;;  %v1093_v49 = vpop.permute.xlu1 %577 }
  0xa5   : > { %v387_v56 = vmul.f32 %v386_v51, %v1032_v18  ;;  %v398_v57 = vmul.f32 %v397_v52, %v1032_v18  ;;  %v512_v63 = vmul.f32 3.8918573e-05, %v1063_v47  ;;  %v427_v7 = vmul.f32 %v426_v58, %v1034_v19 }
  0xa6   : > { %v438_v60 = vmul.f32 %v437_v53, %v1034_v19  ;;  %v463_v61 = vmul.f32 %v462_v54, %v1058_v43  ;;  %v474_v62 = vmul.f32 %v473_v55, %v1058_v43  ;;  %v502_v10 = vadd.f32 0.00028619796, %v501_v59 }
  0xa7   : > { %v399_v0 = vadd.f32 0.4994258, %v398_v57  ;;  %v388_v5 = vadd.f32 0.18741608, %v387_v56  ;;  %v513_v14 = vadd.f32 0.001143296, %v512_v63 }
  0xa8   : > { %v439_v3 = vadd.f32 0.4994258, %v438_v60  ;;  %v475_v4 = vadd.f32 0.014752088, %v474_v62  ;;  %v464_v12 = vadd.f32 0.0036580483, %v463_v61  ;;  %v503_v21 = vmul.f32 %v502_v10, %v1063_v47 }
  0xa9   : > { %v400_v6 = vmul.f32 %v399_v0, %v1032_v18  ;;  %v514_v22 = vmul.f32 %v513_v14, %v1063_v47  ;;  %v389_v23 = vmul.f32 %v388_v5, %v1032_v18  ;;  %v428_v25 = vadd.f32 0.18741608, %v427_v7  ;;  %v1102_v5 = vpop.permute.xlu2 %587 }
  0xaa   : > { %v440_v11 = vmul.f32 %v439_v3, %v1034_v19  ;;  %v476_v13 = vmul.f32 %v475_v4, %v1058_v43  ;;  %v465_v27 = vmul.f32 %v464_v12, %v1058_v43  ;;  %v504_v29 = vadd.f32 0.0036580483, %v503_v21 }
  0xab   : > { %v401_v15 = vadd.f32 1.0, %v400_v6  ;;  %v515_v30 = vadd.f32 0.014752088, %v514_v22  ;;  %v390_v32 = vadd.f32 1.1283791, %v389_v23  ;;  %v429_v33 = vmul.f32 %v428_v25, %v1034_v19 }
  0xac   : > { %v441_v17 = vadd.f32 1.0, %v440_v11  ;;  %v477_v20 = vadd.f32 0.112945676, %v476_v13  ;;  %v466_v36 = vadd.f32 0.05243302, %v465_v27  ;;  %v505_v42 = vmul.f32 %v504_v29, %v1063_v47  ;;  %v1108_v22 = vpop.permute.xlu1 %597 }
  0xad   : > { %888 = vrcp.f32 %v401_v15  ;;  %v516_v38 = vmul.f32 %v515_v30, %v1063_v47  ;;  %v391_v44 = vmul.f32 %v390_v32, %v1023_v8  ;;  %v430_v45 = vadd.f32 1.1283791, %v429_v33 }
  0xae   : > { %890 = vrcp.f32 %v441_v17  ;;  %v478_v28 = vmul.f32 %v477_v20, %v1058_v43  ;;  %v411_v50 = vand.u32 2147483647, %v401_v15  ;;  %v467_v51 = vmul.f32 %v466_v36, %v1058_v43 }
  0xaf   : > { %v517_v48 = vadd.f32 0.112945676, %v516_v38  ;;  %v413_v53 = vand.u32 2147483648, %v401_v15  ;;  %v453_v55 = vand.u32 2147483648, %v441_v17  ;;  %v506_v8 = vadd.f32 0.05243302, %v505_v42 }
  0xb0   : > { %v479_v37 = vadd.f32 0.4994258, %v478_v28  ;;  %v451_v59 = vand.u32 2147483647, %v441_v17  ;;  %vm407_vm2 = vweird.f32 %v401_v15  ;;  %v431_v62 = vmul.f32 %v430_v45, %v1026_v9 }
  0xb1   : > { %v518_v56 = vmul.f32 %v517_v48, %v1063_v47  ;;  %v468_v63 = vadd.f32 0.18741608, %v467_v51  ;;  %v414_v0 = vor.u32 1.1754944e-38, %v413_v53  ;;  %vm447_vm4 = vweird.f32 %v441_v17 }
  0xb2   : > { %v480_v41 = vmul.f32 %v479_v37, %v1058_v43  ;;  %vm412_vm5 = vcmp.eq.f32.partialorder %v411_v50, 8.507059e+37  ;;  %v454_v7 = vor.u32 1.1754944e-38, %v453_v55  ;;  %v507_v10 = vmul.f32 %v506_v8, %v1063_v47 }
  0xb3   : > { %v889_v39 = vpop.eup %888  ;;  %v519_v60 = vadd.f32 0.4994258, %v518_v56  ;;  %vm452_vm7 = vcmp.eq.f32.partialorder %v451_v59, 8.507059e+37  ;;  %v371_v27 = vmul.f32 0.5, %v1018_v1  ;;  %v372_v30 = vmul.f32 0.5, %v1020_v2 }
  0xb4   : > { %v891_v18 = vpop.eup %890  ;;  %v403_v40 = vmul.f32 %v889_v39, %v401_v15  ;;  %v1096_v52 = vadd.f32 1.0, %v480_v41  ;;  %vm408_vm0 = vweird.f32 %v889_v39  ;;  %v508_v25 = vadd.f32 0.18741608, %v507_v10  ;;  %v1120_v41 = vpop.permute.xlu2 %607 }
  0xb5   : > { %v443_v46 = vmul.f32 %v891_v18, %v441_v17  ;;  %vm448_vm1 = vweird.f32 %v891_v18  ;;  %vm409_vm3 = vmor %vm407_vm2, %vm408_vm0  ;;  %v520_v4 = vmul.f32 %v519_v60, %v1063_v47  ;;  %v469_v17 = vmul.f32 %v468_v63, %v1058_v43 }
  0xb6   : > { %v404_v19 = vsub.f32 1.0, %v403_v40  ;;  %892 = vrcp.f32 %v1096_v52  ;;  %vm449_vm6 = vmor %vm447_vm4, %vm448_vm1  ;;  %v493_v36 = vand.u32 2147483648, %v1096_v52  ;;  %v491_v38 = vand.u32 2147483647, %v1096_v52 }
  0xb7   : > { %v444_v54 = vsub.f32 1.0, %v443_v46  ;;  %v521_v9 = vadd.f32 1.0, %v520_v4  ;;  %v470_v33 = vadd.f32 1.1283791, %v469_v17  ;;  %vm487_vm9 = vweird.f32 %v1096_v52 }
  0xb8   : > { %v405_v57 = vmul.f32 %v889_v39, %v404_v19  ;;  %vm492_vm11 = vcmp.eq.f32.partialorder %v491_v38, 8.507059e+37  ;;  %vm717_vm0 = vcmask 1043456  }
  0xb9   : > { %v445_v58 = vmul.f32 %v891_v18, %v444_v54  ;;  %894 = vrcp.f32 %v521_v9  ;;  %v471_v42 = vmul.f32 %v470_v33, %v1045_v31  ;;  %v531_v53 = vand.u32 2147483647, %v521_v9  ;;  %v1127_v31 = vpop.permute.xlu1 %627 }
  0xba   : > { %v406_v61 = vadd.f32 %v889_v39, %v405_v57  ;;  %v533_v56 = vand.u32 2147483648, %v521_v9  ;;  %vm527_vm13 = vweird.f32 %v521_v9 }
  0xbb   : > { %v446_v3 = vadd.f32 %v891_v18, %v445_v58  ;;  %vm1134_vm14 = vcmp.eq.f32.partialorder %v531_v53, 8.507059e+37 }
  0xbc   : > { %v410_v6 = vsel %vm409_vm3, %v889_v39, %v406_v61  ;;  %v893_v13 = vpop.eup %892  ;;  %v534_v4 = vor.u32 1.1754944e-38, %v533_v56 }
  0xbd   : > { %v415_v11 = vsel %vm412_vm5, %v414_v0, %v410_v6  ;;  %v450_v12 = vsel %vm449_vm6, %v891_v18, %v446_v3  ;;  %v483_v21 = vmul.f32 %v893_v13, %v1096_v52  ;;  %vm488_vm8 = vweird.f32 %v893_v13  ;;  %v568_v0 = vpop.permute.xlu0 %567 }
  0xbe   : > { %v416_v14 = vmul.f32 %v415_v11, %v391_v44  ;;  %v455_v15 = vsel %vm452_vm7, %v454_v7, %v450_v12  ;;  %v509_v18 = vmul.f32 %v508_v25, %v1063_v47  ;;  %vm489_vm10 = vmor %vm487_vm9, %vm488_vm8  ;;  %v494_v44 = vor.u32 1.1754944e-38, %v493_v36 }
  0xbf   : > { %v456_v20 = vmul.f32 %v455_v15, %v431_v62  ;;  %v484_v29 = vsub.f32 1.0, %v483_v21  ;;  %v895_v2 = vpop.eup %894  ;;  %v373_v21 = vmul.f32 0.5, %v1039_v24 }
  0xc0   : > { %v817_v23 = vclamps-f32 %v416_v14, 1.0  ;;  %v523_v19 = vmul.f32 %v895_v2, %v521_v9  ;;  %v510_v51 = vadd.f32 1.1283791, %v509_v18  ;;  %vm528_vm12 = vweird.f32 %v895_v2  ;;  %v638_v14 = vpop.permute.xlu2 %637 }
  0xc1   : > { %v818_v28 = vclamps-f32 %v456_v20, 1.0  ;;  %v485_v43 = vmul.f32 %v893_v13, %v484_v29  ;;  %vm529_vm15 = vmor %vm527_vm13, %vm528_vm12  ;;  %v648_v38 = vpop.permute.xlu1 %647 }
  0xc2   : > { %v539_v32 = vadd.f32 1.0, %v817_v23  ;;  %v524_v55 = vsub.f32 1.0, %v523_v19  ;;  %v511_v62 = vmul.f32 %v510_v51, %v1051_v35 }
  0xc3   : > { %v540_v37 = vadd.f32 1.0, %v818_v28  ;;  %v486_v1 = vadd.f32 %v893_v13, %v485_v43 }
  0xc4   : > { %v1114_v39 = vmul.f32 %v539_v32, %v371_v27  ;;  %v525_v61 = vmul.f32 %v895_v2, %v524_v55 }
  0xc5   : > { %v1117_v40 = vmul.f32 %v540_v37, %v372_v30  ;;  %v490_v48 = vsel %vm489_vm10, %v893_v13, %v486_v1 }
  0xc6   : > { %v552_v45 = vperm.slane %v1114_v39, 0  ;;  %v560_v46 = vperm.slane %v1114_v39, 1  ;;  %v495_v50 = vsel %vm492_vm11, %v494_v44, %v490_v48  ;;  %v526_v3 = vadd.f32 %v895_v2, %v525_v61 }
  0xc7   : > { %v553_v47 = vperm.slane %v1117_v40, 0  ;;  %v561_v52 = vperm.slane %v1117_v40, 1  ;;  %v496_v54 = vmul.f32 %v495_v50, %v471_v42  ;;  %v580_v6 = vperm.slane %v1114_v39, 3 }
  0xc8   : > { %v554_v57 = vmul.f32 %v552_v45, %v1079_v16  ;;  %v562_v58 = vmul.f32 %v560_v46, %v1087_v34  ;;  %v570_v10 = vperm.slane %v1114_v39, 2  ;;  %v571_v11 = vperm.slane %v1117_v40, 2 }
  0xc9   : > { %v555_v8 = vmul.f32 %v553_v47, %v1079_v16  ;;  %v563_v59 = vmul.f32 %v561_v52, %v1087_v34  ;;  %v819_v60 = vclamps-f32 %v496_v54, 1.0  ;;  %v581_v16 = vperm.slane %v1117_v40, 3  ;;  %v618_v47 = vpop.permute.xlu0 %617 }
  0xca   : > { %v564_v7 = vadd.f32 %v562_v58, %v554_v57  ;;  %v530_v35 = vsel %vm529_vm15, %v895_v2, %v526_v3  ;;  %v590_v9 = vperm.slane %v1114_v39, 4  ;;  %v591_v13 = vperm.slane %v1117_v40, 4 }
  0xcb   : > { %v565_v34 = vadd.f32 %v563_v59, %v555_v8  ;;  %v541_v12 = vadd.f32 1.0, %v819_v60  ;;  %v535_v15 = vsel %vm1134_vm14, %v534_v4, %v530_v35  ;;  %v572_v17 = vmul.f32 %v570_v10, %v568_v0  ;;  %v678_v4 = vpop.permute.xlu1 %677 }
  0xcc   : > { %v573_v20 = vmul.f32 %v571_v11, %v568_v0  ;;  %v536_v23 = vmul.f32 %v535_v15, %v511_v62  ;;  %v582_v25 = vmul.f32 %v580_v6, %v1093_v49  ;;  %v600_v27 = vperm.slane %v1114_v39, 5 }
  0xcd   : > { %v583_v28 = vmul.f32 %v581_v16, %v1093_v49  ;;  %v601_v29 = vperm.slane %v1117_v40, 5  ;;  %v574_v30 = vadd.f32 %v572_v17, %v564_v7  ;;  %v1151_v36 = vmul.f32 %v541_v12, %v373_v21 }
  0xce   : > { %v575_v32 = vadd.f32 %v573_v20, %v565_v34  ;;  %v820_v33 = vclamps-f32 %v536_v23, 1.0  ;;  %v592_v37 = vmul.f32 %v590_v9, %v1102_v5  ;;  %v593_v43 = vmul.f32 %v591_v13, %v1102_v5 }
  0xcf   : > { %v610_v24 = vperm.slane %v1114_v39, 6  ;;  %v611_v18 = vperm.slane %v1117_v40, 6  ;;  %v584_v1 = vadd.f32 %v582_v25, %v574_v30  ;;  %v374_v49 = vmul.f32 0.5, %v1042_v26 }
  0xd0   : > { %v585_v2 = vadd.f32 %v583_v28, %v575_v32  ;;  %v542_v42 = vadd.f32 1.0, %v820_v33  ;;  %v602_v44 = vmul.f32 %v600_v27, %v1108_v22  ;;  %v620_v45 = vperm.slane %v1114_v39, 7  ;;  %v658_v39 = vpop.permute.xlu2 %657 }
  0xd1   : > { %v603_v46 = vmul.f32 %v601_v29, %v1108_v22  ;;  %v594_v48 = vadd.f32 %v592_v37, %v584_v1  ;;  %v621_v5 = vperm.slane %v1117_v40, 7  ;;  %v630_v51 = vperm.slane %v1151_v36, 0  ;;  %v668_v13 = vpop.permute.xlu0 %667 }
  0xd2   : > { %v595_v19 = vadd.f32 %v593_v43, %v585_v2  ;;  %v546_v50 = vmul.f32 %v542_v42, %v374_v49  ;;  %v612_v53 = vmul.f32 %v610_v24, %v1120_v41  ;;  %v613_v52 = vmul.f32 %v611_v18, %v1120_v41 }
  0xd3   : > { %v604_v26 = vadd.f32 %v602_v44, %v594_v48  ;;  %v640_v56 = vperm.slane %v1151_v36, 1  ;;  %v622_v57 = vmul.f32 %v620_v45, %v618_v47  ;;  %v623_v59 = vmul.f32 %v621_v5, %v618_v47  ;;  %v698_v2 = vpop.permute.xlu1 %697 }
  0xd4   : > { %v605_v54 = vadd.f32 %v603_v46, %v595_v19  ;;  %v631_v55 = vperm.slane %v546_v50, 0  ;;  %v641_v22 = vperm.slane %v546_v50, 1  ;;  %v632_v40 = vmul.f32 %v630_v51, %v1127_v31 }
  0xd5   : > { %v614_v8 = vadd.f32 %v612_v53, %v604_v26  ;;  %v650_v60 = vperm.slane %v1151_v36, 2  ;;  %v651_v62 = vperm.slane %v546_v50, 2  ;;  %v642_v0 = vmul.f32 %v640_v56, %v638_v14 }
  0xd6   : > { %v615_v58 = vadd.f32 %v613_v52, %v605_v54  ;;  %v633_v61 = vmul.f32 %v631_v55, %v1127_v31  ;;  %v660_v3 = vperm.slane %v1151_v36, 3  ;;  %v643_v6 = vmul.f32 %v641_v22, %v638_v14 }
  0xd7   : > { %v624_v63 = vadd.f32 %v622_v57, %v614_v8  ;;  %v661_v16 = vperm.slane %v546_v50, 3  ;;  %v652_v10 = vmul.f32 %v650_v60, %v648_v38  ;;  %v670_v11 = vperm.slane %v1151_v36, 4 }
  0xd8   : > { %v625_v41 = vadd.f32 %v623_v59, %v615_v58  ;;  %v653_v35 = vmul.f32 %v651_v62, %v648_v38  ;;  %v671_v15 = vperm.slane %v546_v50, 4  ;;  %v662_v31 = vmul.f32 %v660_v3, %v658_v39  ;;  %v688_v27 = vpop.permute.xlu2 %687 }
  0xd9   : > { %v634_v7 = vadd.f32 %v632_v40, %v624_v63  ;;  %v680_v17 = vperm.slane %v1151_v36, 5  ;;  %v663_v20 = vmul.f32 %v661_v16, %v658_v39  ;;  %v681_v21 = vperm.slane %v546_v50, 5 }
  0xda   : > { %v635_v34 = vadd.f32 %v633_v61, %v625_v41  ;;  %v690_v14 = vperm.slane %v1151_v36, 6  ;;  %v672_v28 = vmul.f32 %v670_v11, %v668_v13  ;;  %v691_v29 = vperm.slane %v546_v50, 6 }
  0xdb   : > { %v644_v12 = vadd.f32 %v642_v0, %v634_v7  ;;  %v673_v33 = vmul.f32 %v671_v15, %v668_v13  ;;  %v682_v37 = vmul.f32 %v680_v17, %v678_v4  ;;  %v700_v43 = vperm.slane %v1151_v36, 7 }
  0xdc   : > { %v645_v9 = vadd.f32 %v643_v6, %v635_v34  ;;  %v683_v38 = vmul.f32 %v681_v21, %v678_v4  ;;  %v701_v1 = vperm.slane %v546_v50, 7  ;;  %v692_v49 = vmul.f32 %v690_v14, %v688_v27 }
  0xdd   : > { %v654_v23 = vadd.f32 %v652_v10, %v644_v12  ;;  %v693_v42 = vmul.f32 %v691_v29, %v688_v27  ;;  %v702_v46 = vmul.f32 %v700_v43, %v698_v2 }
  0xde   : > { %v655_v25 = vadd.f32 %v653_v35, %v645_v9  ;;  %v703_v48 = vmul.f32 %v701_v1, %v698_v2 }
  0xdf   : > { %v664_v30 = vadd.f32 %v662_v31, %v654_v23 }
  0xe0   : > { %v665_v32 = vadd.f32 %v663_v20, %v655_v25  ;;  %v710_v5 = vpop.permute.xlu2 %709 }
  0xe1   : > { %v674_v24 = vadd.f32 %v672_v28, %v664_v30 }
  0xe2   : > { %v675_v18 = vadd.f32 %v673_v33, %v665_v32 }
  0xe3   : > { %v684_v44 = vadd.f32 %v682_v37, %v674_v24 }
  0xe4   : > { %v685_v45 = vadd.f32 %v683_v38, %v675_v18 }
  0xe5   : > { %v694_v19 = vadd.f32 %v692_v49, %v684_v44 }
  0xe6   : > { %v695_v47 = vadd.f32 %v693_v42, %v685_v45 }
  0xe7   : > { %v704_v51 = vadd.f32 %v702_v46, %v694_v19 }
  0xe8   : > { %v705_v53 = vadd.f32 %v703_v48, %v695_v47 }
  0xe9   : > { %v712_v36 = vadd.f32 %v710_v5, %v704_v51 }
  0xea   : > { %v713_v52 = vadd.f32 %v710_v5, %v705_v53 }
  0xec   : > { %v716_v50 = vrot.slane %v713_v52, 4 }
  0xee   : > { %v718_v26 = vsel %vm717_vm0, %v712_v36, %v716_v50 }
  0xef   : > { %720 = vst [vmem:[%s262_s15] sm:$0xff] %v718_v26 }
  0xf0 PF: > { %s15_s20 = sadd.s32 1, %s918_s20   ;;  %s1196_s18 = smov %s914_s19 }
  0xf1   : > { %p12_p5 = scmp.ge.s32.totalorder %s15_s20, 4   ;;  %s1197_s19 = smov %s1199_s21 }
  0xf3   :  { %14 = sbr.rel (!%p12_p5) target bundleno = 2 (0x2), region = 70 }

</bundles_post_ra>
